<compile_context>
chip_gen: v7x
topology: tpu7x:2x2x1
jax: 0.10.0
libtpu: 0.0.40
codegen_flags: <defaults>
</compile_context>

<pallas_src>
import functools

import jax
import jax.numpy as jnp
import numpy as np
from jax.experimental import pallas as pl
from jax.experimental.pallas import tpu as pltpu


def _span_enum_kernel(s_ref, e_ref, emb_ref, g_ref, beta_ref, out_ref, *,
                      tile_i, tile_j, max_len):
    """One (batch, i-tile, j-tile) block of the span-enumeration output.

    s_ref   : (1, TI, dim2)    S = s_mapping(B_s), i rows of this batch
    e_ref   : (1, TJ, dim2)    E = s_mapping(B_e), j rows of this batch
    emb_ref : (max_len, dim2)  relative-position embedding table (resident)
    g_ref   : (1, dim2)        LayerNorm gamma
    beta_ref: (1, dim2)        LayerNorm beta
    out_ref : (1, TI, TJ, dim2)
    """
    eps = 1e-12
    dim2 = out_ref.shape[-1]

    i0 = pl.program_id(1) * tile_i
    j0 = pl.program_id(2) * tile_j

    # |j - i| relative positions for this (TI, TJ) tile.
    row = jax.lax.broadcasted_iota(jnp.int32, (tile_i, tile_j), 0) + i0
    col = jax.lax.broadcasted_iota(jnp.int32, (tile_i, tile_j), 1) + j0
    rel = jnp.abs(col - row)                                       # (TI, TJ)

    # Gather emb_table[rel] without a dynamic gather: exact one-hot matmul on
    # the MXU (0/1 weights -> bit-identical to an index gather).
    # TODO(synk): for very large max_len a real row-gather / DMA gather would
    # beat the one-hot matmul; at typical max_len it is cheap and robust.
    tbl = jax.lax.broadcasted_iota(jnp.int32, (tile_i, tile_j, max_len), 2)
    onehot = (rel[..., None] == tbl).astype(jnp.float32)           # (TI,TJ,L)
    pos = jnp.dot(onehot.reshape(tile_i * tile_j, max_len), emb_ref[...],
                  preferred_element_type=jnp.float32)
    pos = pos.reshape(tile_i, tile_j, dim2)                        # (TI,TJ,D)

    # N[i, j, :] = S[i] + E[j] + pos[|j-i|].  Add E + pos first so S is not
    # expanded into a tile-sized temporary before the final add.
    t = e_ref[0][None, :, :] + pos                                 # (TI,TJ,D)
    n = s_ref[0][:, None, :] + t                                   # (TI,TJ,D)

    # Fused LayerNorm over dim2 (biased variance, as in nn.LayerNorm):
    # single-pass variance, gamma folded into the scale -> one FMA tail.
    mean = jnp.mean(n, axis=-1, keepdims=True)                     # (TI,TJ,1)
    var = jnp.mean(n * n, axis=-1, keepdims=True) - mean * mean
    scale = jax.lax.rsqrt(var + eps) * g_ref[...]                  # (TI,TJ,D)
    shift = beta_ref[...] - mean * scale
    out_ref[0] = (n * scale + shift).astype(out_ref.dtype)


def _pick_tile(seq, cap=128):
    """Largest divisor of seq that is <= cap and a multiple of 8 (or == seq)."""
    for t in range(min(seq, cap), 0, -1):
        if seq % t == 0 and (t % 8 == 0 or t == seq):
            return t
    return seq


def span_enumeration_pallas(B_s, B_e, w_t, bias, emb_table, gamma, beta, *,
                            tile_i=None, tile_j=None, out_dtype=jnp.float32):
    """SpanEnumeration forward.  w_t is s_mapping.weight pre-transposed."""
    bs, seq, _dim1 = B_s.shape
    max_len, dim2 = emb_table.shape
    assert seq <= max_len

    # Hoisted projections (the module applies s_mapping to BOTH inputs).
    S = (B_s @ w_t + bias).astype(jnp.float32)                     # (bs,seq,D)
    E = (B_e @ w_t + bias).astype(jnp.float32)                     # (bs,seq,D)

    tile_i = tile_i or _pick_tile(seq)
    tile_j = tile_j or _pick_tile(seq)
    assert seq % tile_i == 0 and seq % tile_j == 0
    grid = (bs, seq // tile_i, seq // tile_j)

    kernel = functools.partial(_span_enum_kernel, tile_i=tile_i,
                               tile_j=tile_j, max_len=max_len)

    # Rough VMEM budget: double-buffered output tile, the n/t/pos temporaries,
    # the one-hot scratch and the small resident inputs, plus headroom.
    tile_bytes = tile_i * tile_j * dim2 * 4
    onehot_bytes = tile_i * tile_j * max_len * 4
    resident = (max_len + 4 * max(tile_i, tile_j) + 4) * dim2 * 4
    vmem_limit = 6 * tile_bytes + 2 * onehot_bytes + 2 * resident + (4 << 20)
    vmem_limit = int(max(32 << 20, min(100 << 20, vmem_limit)))

    return pl.pallas_call(
        kernel,
        out_shape=jax.ShapeDtypeStruct((bs, seq, seq, dim2), out_dtype),
        grid_spec=pltpu.PrefetchScalarGridSpec(
            num_scalar_prefetch=0,
            grid=grid,
            in_specs=[
                pl.BlockSpec((1, tile_i, dim2), lambda b, i, j: (b, i, 0)),
                pl.BlockSpec((1, tile_j, dim2), lambda b, i, j: (b, j, 0)),
                pl.BlockSpec((max_len, dim2), lambda b, i, j: (0, 0)),
                pl.BlockSpec((1, dim2), lambda b, i, j: (0, 0)),
                pl.BlockSpec((1, dim2), lambda b, i, j: (0, 0)),
            ],
            out_specs=pl.BlockSpec((1, tile_i, tile_j, dim2),
                                   lambda b, i, j: (b, i, j, 0)),
        ),
        compiler_params=pltpu.CompilerParams(
            dimension_semantics=("parallel", "parallel", "parallel"),
            vmem_limit_bytes=vmem_limit),
    )(S, E, emb_table, gamma, beta)


def span_enumeration_ref(B_s, B_e, w_t, bias, emb_table, gamma, beta):
    """Pure-JAX reference mirroring the PyTorch forward."""
    bs, seq, _ = B_s.shape
    s = B_s @ w_t + bias                                           # (bs,seq,D)
    e = B_e @ w_t + bias                                           # (bs,seq,D)
    ii = jnp.arange(seq)[:, None]
    jj = jnp.arange(seq)[None, :]
    pos = emb_table[jnp.abs(jj - ii)]                              # (seq,seq,D)
    n = s[:, :, None, :] + e[:, None, :, :] + pos[None]
    mean = jnp.mean(n, axis=-1, keepdims=True)
    var = jnp.mean(jnp.square(n - mean), axis=-1, keepdims=True)
    return (n - mean) * jax.lax.rsqrt(var + 1e-12) * gamma + beta


if __name__ == "__main__":
    # Small shapes consistent with the module; dim2 is a multiple of 128 so
    # the dominant HBM writeback is lane-dense, and tile 8x8 exercises the
    # (batch, i, j) grid.
    bs, seq_len, dim1, dim2, max_len = 2, 16, 64, 128, 32

    key = jax.random.PRNGKey(0)
    k_bs, k_be, k_w, k_b, k_emb, k_g, k_beta = jax.random.split(key, 7)

    B_s = jax.random.normal(k_bs, (bs, seq_len, dim1), jnp.float32)
    B_e = jax.random.normal(k_be, (bs, seq_len, dim1), jnp.float32)

    # s_mapping: Linear(dim1, dim2), stored pre-transposed as (dim1, dim2).
    w_t = 0.05 * jax.random.normal(k_w, (dim1, dim2), jnp.float32)
    bias = 0.05 * jax.random.normal(k_b, (1, dim2), jnp.float32)
    # pos_embedding: Embedding(max_len, dim2).
    emb_table = 0.05 * jax.random.normal(k_emb, (max_len, dim2), jnp.float32)
    # LayerNorm affine params.
    gamma = 1.0 + 0.1 * jax.random.normal(k_g, (1, dim2), jnp.float32)
    beta = 0.1 * jax.random.normal(k_beta, (1, dim2), jnp.float32)

    out = span_enumeration_pallas(B_s, B_e, w_t, bias, emb_table, gamma, beta,
                                  tile_i=8, tile_j=8)
    out = jax.block_until_ready(out)

    ref = span_enumeration_ref(B_s, B_e, w_t, bias, emb_table, gamma, beta)
    np.testing.assert_allclose(np.asarray(out), np.asarray(ref),
                               rtol=1e-4, atol=1e-4)

    assert out.shape == (bs, seq_len, seq_len, dim2)
    print("KERNEL_OK")
</pallas_src>

<mosaic_0001>
module attributes {stable_mosaic.version = 11 : i64} {
  func.func @_span_enum_kernel(%arg0: i32, %arg1: i32, %arg2: i32, %arg3: memref<1x8x128xf32, #tpu.memory_space<vmem>>, %arg4: memref<1x8x128xf32, #tpu.memory_space<vmem>>, %arg5: memref<32x128xf32, #tpu.memory_space<vmem>>, %arg6: memref<1x128xf32, #tpu.memory_space<vmem>>, %arg7: memref<1x128xf32, #tpu.memory_space<vmem>>, %arg8: memref<1x8x8x128xf32, #tpu.memory_space<vmem>>) attributes {dimension_semantics = [#tpu.dimension_semantics<parallel>, #tpu.dimension_semantics<parallel>, #tpu.dimension_semantics<parallel>], iteration_bounds = array<i64: 2, 2, 2>, scalar_prefetch = 0 : i64, scratch_operands = 0 : i64, tpu.core_type = #tpu.core_type<tc>, window_params = [{transform_indices = @transform_0, window_bounds = array<i64: 1, 8, 128>}, {transform_indices = @transform_1, window_bounds = array<i64: 1, 8, 128>}, {pipeline_mode = #tpu.pipeline_mode<synchronous>, transform_indices = @transform_2, window_bounds = array<i64: 32, 128>}, {pipeline_mode = #tpu.pipeline_mode<synchronous>, transform_indices = @transform_3, window_bounds = array<i64: 1, 128>}, {pipeline_mode = #tpu.pipeline_mode<synchronous>, transform_indices = @transform_4, window_bounds = array<i64: 1, 128>}, {transform_indices = @transform_5, window_bounds = array<i64: 1, 8, 8, 128>}]} {
    %c8_i32 = arith.constant 8 : i32
    %0 = arith.muli %arg1, %c8_i32 : i32
    %c8_i32_0 = arith.constant 8 : i32
    %1 = arith.muli %arg2, %c8_i32_0 : i32
    %2 = tpu.iota {dimensions = array<i32: 0>} : vector<8x8xi32>
    %3 = vector.broadcast %0 : i32 to vector<8x8xi32>
    %4 = arith.addi %2, %3 : vector<8x8xi32>
    %5 = tpu.iota {dimensions = array<i32: 1>} : vector<8x8xi32>
    %6 = vector.broadcast %1 : i32 to vector<8x8xi32>
    %7 = arith.addi %5, %6 : vector<8x8xi32>
    %8 = arith.subi %7, %4 : vector<8x8xi32>
    %9 = math.absi %8 : vector<8x8xi32>
    %10 = tpu.iota {dimensions = array<i32: 2>} : vector<8x8x32xi32>
    %11 = vector.shape_cast %9 : vector<8x8xi32> to vector<8x8x1xi32>
    %12 = vector.broadcast %11 : vector<8x8x1xi32> to vector<8x8x32xi32>
    %13 = arith.cmpi eq, %12, %10 : vector<8x8x32xi32>
    %14 = arith.extui %13 : vector<8x8x32xi1> to vector<8x8x32xi32>
    %15 = arith.sitofp %14 : vector<8x8x32xi32> to vector<8x8x32xf32>
    %16 = vector.shape_cast %15 : vector<8x8x32xf32> to vector<64x32xf32>
    %c0 = arith.constant 0 : index
    %c0_1 = arith.constant 0 : index
    %17 = vector.load %arg5[%c0, %c0_1] : memref<32x128xf32, #tpu.memory_space<vmem>>, vector<32x128xf32>
    %cst = arith.constant dense<0.000000e+00> : vector<64x128xf32>
    %18 = tpu.matmul %16, %17, %cst {dimension_numbers = #tpu.dot_dimension_numbers<[1], [0], [0], [1], [0, 0, 1, 1], [], []>} : vector<64x32xf32>, vector<32x128xf32>, vector<64x128xf32> -> vector<64x128xf32>
    %19 = vector.shape_cast %18 : vector<64x128xf32> to vector<8x8x128xf32>
    %c0_2 = arith.constant 0 : index
    %c0_3 = arith.constant 0 : index
    %c0_4 = arith.constant 0 : index
    %20 = vector.load %arg4[%c0_2, %c0_3, %c0_4] : memref<1x8x128xf32, #tpu.memory_space<vmem>>, vector<1x8x128xf32>
    %21 = vector.shape_cast %20 : vector<1x8x128xf32> to vector<8x128xf32>
    %22 = vector.shape_cast %21 : vector<8x128xf32> to vector<1x8x128xf32>
    %23 = vector.broadcast %22 : vector<1x8x128xf32> to vector<8x8x128xf32>
    %24 = arith.addf %23, %19 : vector<8x8x128xf32>
    %c0_5 = arith.constant 0 : index
    %c0_6 = arith.constant 0 : index
    %c0_7 = arith.constant 0 : index
    %25 = vector.load %arg3[%c0_5, %c0_6, %c0_7] : memref<1x8x128xf32, #tpu.memory_space<vmem>>, vector<1x8x128xf32>
    %26 = vector.shape_cast %25 : vector<1x8x128xf32> to vector<8x128xf32>
    %27 = vector.shape_cast %26 : vector<8x128xf32> to vector<8x1x128xf32>
    %28 = vector.broadcast %27 : vector<8x1x128xf32> to vector<8x8x128xf32>
    %29 = arith.addf %28, %24 : vector<8x8x128xf32>
    %cst_8 = arith.constant dense<0.000000e+00> : vector<8x8xf32>
    %30 = vector.multi_reduction <add>, %29, %cst_8 [2] : vector<8x8x128xf32> to vector<8x8xf32>
    %31 = vector.shape_cast %30 : vector<8x8xf32> to vector<8x8x1xf32>
    %cst_9 = arith.constant 1.280000e+02 : f32
    %32 = vector.broadcast %cst_9 : f32 to vector<8x8x1xf32>
    %33 = arith.divf %31, %32 : vector<8x8x1xf32>
    %34 = arith.mulf %29, %29 : vector<8x8x128xf32>
    %cst_10 = arith.constant dense<0.000000e+00> : vector<8x8xf32>
    %35 = vector.multi_reduction <add>, %34, %cst_10 [2] : vector<8x8x128xf32> to vector<8x8xf32>
    %36 = vector.shape_cast %35 : vector<8x8xf32> to vector<8x8x1xf32>
    %cst_11 = arith.constant 1.280000e+02 : f32
    %37 = vector.broadcast %cst_11 : f32 to vector<8x8x1xf32>
    %38 = arith.divf %36, %37 : vector<8x8x1xf32>
    %39 = arith.mulf %33, %33 : vector<8x8x1xf32>
    %40 = arith.subf %38, %39 : vector<8x8x1xf32>
    %cst_12 = arith.constant 9.99999996E-13 : f32
    %41 = vector.broadcast %cst_12 : f32 to vector<8x8x1xf32>
    %42 = arith.addf %40, %41 : vector<8x8x1xf32>
    %43 = math.rsqrt %42 : vector<8x8x1xf32>
    %c0_13 = arith.constant 0 : index
    %c0_14 = arith.constant 0 : index
    %44 = vector.load %arg6[%c0_13, %c0_14] : memref<1x128xf32, #tpu.memory_space<vmem>>, vector<1x128xf32>
    %45 = vector.shape_cast %44 : vector<1x128xf32> to vector<1x1x128xf32>
    %46 = vector.broadcast %43 : vector<8x8x1xf32> to vector<8x8x128xf32>
    %47 = vector.broadcast %45 : vector<1x1x128xf32> to vector<8x8x128xf32>
    %48 = arith.mulf %46, %47 : vector<8x8x128xf32>
    %c0_15 = arith.constant 0 : index
    %c0_16 = arith.constant 0 : index
    %49 = vector.load %arg7[%c0_15, %c0_16] : memref<1x128xf32, #tpu.memory_space<vmem>>, vector<1x128xf32>
    %50 = vector.broadcast %33 : vector<8x8x1xf32> to vector<8x8x128xf32>
    %51 = arith.mulf %50, %48 : vector<8x8x128xf32>
    %52 = vector.shape_cast %49 : vector<1x128xf32> to vector<1x1x128xf32>
    %53 = vector.broadcast %52 : vector<1x1x128xf32> to vector<8x8x128xf32>
    %54 = arith.subf %53, %51 : vector<8x8x128xf32>
    %55 = arith.mulf %29, %48 : vector<8x8x128xf32>
    %56 = arith.addf %55, %54 : vector<8x8x128xf32>
    %c0_17 = arith.constant 0 : index
    %c0_18 = arith.constant 0 : index
    %c0_19 = arith.constant 0 : index
    %c0_20 = arith.constant 0 : index
    %57 = vector.load %arg8[%c0_17, %c0_18, %c0_19, %c0_20] : memref<1x8x8x128xf32, #tpu.memory_space<vmem>>, vector<1x8x8x128xf32>
    %58 = vector.shape_cast %57 : vector<1x8x8x128xf32> to vector<8x8x128xf32>
    %59 = vector.shape_cast %56 : vector<8x8x128xf32> to vector<1x8x8x128xf32>
    tpu.vector_store %arg8[%c0_17, %c0_18, %c0_19, %c0_20], %59 {strides = array<i32>} : memref<1x8x8x128xf32, #tpu.memory_space<vmem>>, vector<1x8x8x128xf32>,
    return
  }
  func.func @transform_0(%arg0: i32, %arg1: i32, %arg2: i32) -> (i32, i32, i32) {
    %c0_i32 = arith.constant 0 : i32
    %c0_i32_0 = arith.constant 0 : i32
    return %arg0, %arg1, %c0_i32 : i32, i32, i32
  }
  func.func @transform_1(%arg0: i32, %arg1: i32, %arg2: i32) -> (i32, i32, i32) {
    %c0_i32 = arith.constant 0 : i32
    %c0_i32_0 = arith.constant 0 : i32
    return %arg0, %arg2, %c0_i32 : i32, i32, i32
  }
  func.func @transform_2(%arg0: i32, %arg1: i32, %arg2: i32) -> (i32, i32) {
    %c0_i32 = arith.constant 0 : i32
    %c0_i32_0 = arith.constant 0 : i32
    %c0_i32_1 = arith.constant 0 : i32
    return %c0_i32, %c0_i32_0 : i32, i32
  }
  func.func @transform_3(%arg0: i32, %arg1: i32, %arg2: i32) -> (i32, i32) {
    %c0_i32 = arith.constant 0 : i32
    %c0_i32_0 = arith.constant 0 : i32
    %c0_i32_1 = arith.constant 0 : i32
    return %c0_i32, %c0_i32_0 : i32, i32
  }
  func.func @transform_4(%arg0: i32, %arg1: i32, %arg2: i32) -> (i32, i32) {
    %c0_i32 = arith.constant 0 : i32
    %c0_i32_0 = arith.constant 0 : i32
    %c0_i32_1 = arith.constant 0 : i32
    return %c0_i32, %c0_i32_0 : i32, i32
  }
  func.func @transform_5(%arg0: i32, %arg1: i32, %arg2: i32) -> (i32, i32, i32, i32) {
    %c0_i32 = arith.constant 0 : i32
    %c0_i32_0 = arith.constant 0 : i32
    return %arg0, %arg1, %arg2, %c0_i32 : i32, i32, i32, i32
  }
}

</mosaic_0001>

<bundles_post_ra>
// kernel: tpu_custom_call.1
= control target key start
LH: loop header
LB: loop body
LE: loop exit
PB: predicated region body
PF: predicated region fallthrough
CT: control target
= control target key end

     0   :  { %s2083_s0 = inlined_call_operand.hbm [shape: f32[2,16,128], index: 0, kind: input, shape index: {}]   ;;  %s2084_s1 = inlined_call_operand.hbm [shape: f32[2,16,128], index: 1, kind: input, shape index: {}]   ;;  %s2085_s2 = inlined_call_operand.hbm [shape: f32[32,128], index: 2, kind: input, shape index: {}]   ;;  %s2086_s3 = inlined_call_operand.vmem [shape: f32[1,128], index: 3, kind: input, shape index: {}]   ;;  %s2087_s4 = inlined_call_operand.vmem [shape: f32[1,128], index: 4, kind: input, shape index: {}]   ;;  %s2088_s5 = inlined_call_operand.hbm [shape: f32[2,16,16,128], index: 5, kind: output, shape index: {}]  }
   0x1   :  { %2111 = sst [smem:[#allocation25_spill]] %s2084_s1 }
   0x2   :  { %2112 = sst [smem:[#allocation26_spill]] %s2085_s2 }
   0x3   :  { %2113 = sst [smem:[#allocation27_spill]] %s2086_s3 }
   0x4   :  { %2114 = sst [smem:[#allocation28_spill]] %s2087_s4 }
   0x5   :  { %2115 = sst [smem:[#allocation29_spill]] %s2088_s5 }
   0x6   :  { %10 = vsyncpa [#allocation3], 0 }
   0x7   :  { %12 = vsyncpa [#allocation3 + $0x1], 0 }
   0x8   :  { %13 = vsyncpa [#allocation6], 0 }
   0x9   :  { %15 = vsyncpa [#allocation6 + $0x1], 0 }
   0xa   :  { %16 = vsyncpa [#allocation4], 0 }
   0xb   :  { %18 = vsyncpa [#allocation4 + $0x1], 0  ;;  %s1530_s18 = smov 0   ;;  %s1532_s19 = smov 0  }
   0xc   :  { %s1534_s20 = smov 0   ;;  %s1536_s21 = smov 0  }
   0xd   :  { %s1538_s22 = smov 0   ;;  %s1540_s23 = smov 0  }
   0xe   :  { %s1542_s24 = smov 0   ;;  %s1544_s25 = smov 0  }
   0xf   :  { %s1546_s26 = smov 0   ;;  %s1548_s27 = smov 0  }
  0x10   :  { %s1550_s28 = smov 0   ;;  %s1552_s29 = smov 0  }
  0x11   :  { %s1554_s30 = smov 0   ;;  %s1556_s6 = smov 0  }
  0x12   :  { %s1558_s7 = smov 0   ;;  %s1560_s8 = smov 0  }
  0x13 LB: > { %2116 = sst [smem:[#allocation13_spill]] %s1427_s18  ;;  %s1611_s9 = sadd.s32 4294967295, %s1487_s8   ;;  %s1487_s8 = sphi %s1560_s8, %s24_s8   ;;  %s1483_s7 = sphi %s1558_s7, %s2182_s7   ;;  %s1479_s6 = sphi %s1556_s6, %s2181_s6   ;;  %s1475_s30 = sphi %s1554_s30, %s2180_s30   ;;  %s1471_s29 = sphi %s1552_s29, %s2179_s29   ;;  %s1467_s28 = sphi %s1550_s28, %s2178_s28   ;;  %s1463_s27 = sphi %s1548_s27, %s2177_s27   ;;  %s1459_s26 = sphi %s1546_s26, %s2176_s26   ;;  %s1455_s25 = sphi %s1544_s25, %s2175_s25   ;;  %s1451_s24 = sphi %s1542_s24, %s2166_s24   ;;  %s1447_s23 = sphi %s1540_s23, %s2174_s23   ;;  %s1443_s22 = sphi %s1538_s22, %s2173_s22   ;;  %s1439_s21 = sphi %s1536_s21, %s2172_s21   ;;  %s1435_s20 = sphi %s1534_s20, %s2171_s20   ;;  %s1431_s19 = sphi %s1532_s19, %s2170_s19   ;;  %s1427_s18 = sphi %s1530_s18, %s2169_s18  }
  0x14   : > { %2117 = sst [smem:[#allocation14_spill]] %s1431_s19  ;;  %s959_s10 = sadd.s32 4294967294, %s1487_s8  }
  0x15   : > { %2118 = sst [smem:[#allocation15_spill]] %s1455_s25  ;;  %p2094_p0 = scmp.eq.s32.totalorder %s1611_s9, 0 }
  0x16   : > { %2119 = sst [smem:[#allocation16_spill]] %s1463_s27  ;;  %p183_p1 = scmp.ne.s32.totalorder %s1435_s20, %s1431_s19 }
  0x17   : > { %2120 = sst [smem:[#allocation17_spill]] %s1467_s28  ;;  %p184_p2 = scmp.eq.s32.totalorder %s1611_s9, 7 }
  0x18   : > { %2121 = sst [smem:[#allocation18_spill]] %s1471_s29  ;;  %p189_p3 = scmp.ne.s32.totalorder %s1431_s19, %s1427_s18 }
  0x19   : > { %p190_p4 = scmp.eq.s32.totalorder %s959_s10, 7  ;;  %p960_p5 = scmp.ge.s32.totalorder %s1487_s8, 1 }
  0x1a   : > { %p1621_p6 = por %p184_p2, %p183_p1  ;;  %p197_p7 = scmp.lt.s32.totalorder %s1487_s8, 9 }
  0x1b   : > { %p1626_p8 = por %p190_p4, %p189_p3  ;;  %s1489_s14 = smov [#allocation7]  }
  0x1c   : > { %s2122_s11 = scalar_select %p1621_p6, 1, 0 }
  0x1d   : > { %s2124_s12 = scalar_select %p1626_p8, 1, 0 }
  0x1e   : > { %2123 = sst [smem:[#allocation19_spill]] %s2122_s11  ;;  %p1630_p9 = pnand %p960_p5, %p197_p7 }
  0x1f   : > { %2125 = sst [smem:[#allocation20_spill]] %s2124_s12  ;;  %s209_s15 = sshll.u32 %s1489_s14, 4  ;;  %s210_s15 = int_to_ptr.vmem [resolvable:$true] %s209_s15 }
  0x20   : > { %s2126_s13 = scalar_select %p1630_p9, 1, 0 }
  0x21   : > { %p1057_p10 = pneg %p1630_p9  ;;  %s2129_s2 = sld [smem:[#allocation26_spill]] }
  0x22   : > { %2127 = sst [smem:[#allocation21_spill]] %s2126_s13 }
  0x23   : > { %p1638_p11 = pnand %p1057_p10, %p2094_p0 }
  0x25   : > { %p1231_p13 = pneg %p1638_p11 }
  0x27   : > { %s1229_s12 = scalar_lea.hbm %s2129_s2, 512 }
  0x28   : > { %p1230_p12 = scmp.ne.s32.totalorder %s2129_s2, %s1229_s12  ;;  %p1236_p3 = scmp.lt.u32.totalorder %s1229_s12, %s2129_s2 }
  0x2a   : > { %p1232_p1 = pnand %p1231_p13, %p1230_p12 }
  0x2c   : > { %p1233_p2 = pneg %p1232_p1 }
  0x2e   : > { %p1238_p4 = pnand %p1236_p3, %p1233_p2 }
  0x30   : > { %1241 = shalt.err (!%p1238_p4)
}
  0x31   : > { %s1242_s29 = scalar_lea.vmem %s210_s15, 512  ;;  %p1250_p0 = scmp.lt.s32.totalorder %s210_s15, %s210_s15 }
  0x32   : > { %p1243_p5 = scmp.ne.s32.totalorder %s210_s15, %s1242_s29  ;;  %p1251_p8 = scmp.lt.s32.totalorder %s1242_s29, %s1242_s29 }
  0x34   : > { %p1245_p7 = pnand %p1243_p5, %p1231_p13  ;;  %p1252_p6 = por %p1251_p8, %p1250_p0 }
  0x36   : > { %p1246_p10 = pneg %p1245_p7 }
  0x38   : > { %p1253_p9 = pnand %p1252_p6, %p1246_p10 }
  0x3a   : > { %1256 = shalt.err (!%p1253_p9)
}
  0x3b   : > { %s1490_s5 = smov 128   ;;  %s1491_s18 = smov 8  }
  0x3c   : > { %1060 = dma.hbm_to_vmem [thread:$0]  (!%p1638_p11), %s2129_s2, 512, %s210_s15, [#allocation6], %s1490_s5, %s1490_s5, %s1491_s18  }
  0x3d   : > { %s36_s12 = sadd.s32 1, %s1475_s30  ;;  %s39_s17 = sadd.s32 1, %s1479_s6 }
  0x3e   : > { %p37_p0 = scmp.ge.s32.totalorder %s36_s12, 2  ;;  %s43_s10 = sadd.s32 1, %s1483_s7 }
  0x3f   : > { %s52_s14 = sadd.s32 1, %s1459_s26  ;;  %p59_p6 = scmp.ne.s32.totalorder %s1459_s26, %s1455_s25 }
  0x40   : > { %s2184_s12 = smov (%p37_p0, %s36_s12), 0  ;;  %s2186_s17 = smov (!%p37_p0, %s39_s17), %s1479_s6 }
  0x41   : > { %2130 = sst [smem:[#allocation22_spill]] %s2184_s12  ;;  %p2109_p8 = scmp.eq.s32.totalorder %s1487_s8, 0 }
  0x42   : > { %p65_p9 = scmp.ne.s32.totalorder %s1455_s25, %s1451_s24  ;;  %p41_p11 = scmp.ge.s32.totalorder %s2186_s17, 2 }
  0x43   : > { %s76_s15 = ssub.s32 %s1475_s30, %s2184_s12  ;;  %p1674_p12 = por %p2109_p8, %p59_p6 }
  0x44   : > { %p2132_p13 = scmp.eq.s32.totalorder %s1611_s9, 0  ;;  %s2188_s17 = smov (%p41_p11, %s2186_s17), 0 }
  0x45   : > { %2135 = sst [smem:[#allocation24_spill]] %s2188_s17  ;;  %s2190_s10 = smov (!%p41_p11, %s43_s10), %s1483_s7 }
  0x46   : > { %p1680_p1 = por %p2132_p13, %p65_p9  ;;  %s48_s18 = ssub.s32 %s1479_s6, %s2188_s17 }
  0x47   : > { %s173_s24 = sadd.s32 1, %s1435_s20  ;;  %p45_p2 = scmp.ge.s32.totalorder %s2190_s10, 2 }
  0x48   : > { %s2133_s5 = scalar_select %p1680_p1, 1, 0 }
  0x49   : > { %p2108_p3 = scmp.lt.s32.totalorder %s1487_s8, 8  ;;  %s229_s29 = sand.u32 1, %s1459_s26  }
  0x4a   : > { %2134 = sst [smem:[#allocation23_spill]] %s2133_s5  ;;  %s964_s11 = sshll.u32 %s1483_s7, 1 }
  0x4b   : > { %s2192_s10 = smov (%p45_p2, %s2190_s10), 0  ;;  %s963_s2 = sshll.u32 %s229_s29, 3 }
  0x4c   : > { %s47_s12 = ssub.s32 %s1483_s7, %s2192_s10  ;;  %s238_s27 = sadd.s32 %s1479_s6, %s964_s11 }
  0x4d   : > { %s49_s4 = sor.u32 %s48_s18, %s47_s12  ;;  %s77_s3 = sor.u32 %s76_s15, %s47_s12 }
  0x4e   : > { %p50_p4 = scmp.eq.s32.totalorder %s49_s4, 0  ;;  %p1697_p5 = scmp.eq.s32.totalorder %s77_s3, 0 }
  0x4f   : > { %s170_s17 = sor.u32 %s76_s15, %s49_s4  ;;  %s965_s5 = sshll.u32 %s238_s27, 7 }
  0x50   : > { %s1703_s28 = scalar_select %p50_p4, %s1459_s26, %s52_s14  }
  0x51   : > { %p171_p7 = scmp.eq.s32.totalorder %s170_s17, 0  ;;  %s1708_s1 = scalar_lea.hbm %s2083_s0, %s965_s5 }
  0x52   : > { %s233_s12 = scalar_lea.vmem [#allocation2], %s963_s2  ;;  %p1719_p10 = pnand %p2108_p3, %p1674_p12 }
  0x53   : > { %s242_s3 = sshll.u32 %s233_s12, 4  ;;  %s1724_s25 = sadd.s32 %s1475_s30, %s964_s11  ;;  %s1713_s3 = int_to_ptr.vmem [resolvable:$true] %s242_s3 }
  0x54   : > { %s1711_s18 = scalar_select %p171_p7, %s1435_s20, %s173_s24  }
  0x55   : > { %s230_s27 = scalar_lea.sflag [#allocation3], %s229_s29  ;;  %s1257_s13 = scalar_lea.hbm %s1708_s1, 128 }
  0x56   : > { %p1258_p0 = scmp.ne.s32.totalorder %s1708_s1, %s1257_s13  ;;  %p1259_p6 = pneg %p1719_p10 }
  0x57   : > { %s1262_s14 = scalar_lea.hbm %s2083_s0, 512  ;;  %p1263_p12 = scmp.lt.u32.totalorder %s1708_s1, %s2083_s0 }
  0x58   : > { %p1260_p9 = pnand %p1259_p6, %p1258_p0  ;;  %p1264_p13 = scmp.lt.u32.totalorder %s1262_s14, %s1257_s13 }
  0x59   : > { %p1266_p4 = scmp.lt.u32.totalorder %s1257_s13, %s1708_s1 }
  0x5a   : > { %p1261_p11 = pneg %p1260_p9  ;;  %p1265_p2 = por %p1264_p13, %p1263_p12 }
  0x5c   : > { %p1267_p7 = por %p1266_p4, %p1265_p2 }
  0x5e   : > { %p1268_p3 = pnand %p1267_p7, %p1261_p11 }
  0x60   : > { %1271 = shalt.err (!%p1268_p3)
}
  0x61   : > { %s1272_s5 = scalar_lea.vmem %s1713_s3, 128  ;;  %s1492_s24 = smov [#allocation2]  }
  0x62   : > { %p1273_p0 = scmp.ne.s32.totalorder %s1713_s3, %s1272_s5  ;;  %s1277_s29 = sshll.u32 %s1492_s24, 4  ;;  %s1278_s29 = int_to_ptr.vmem [resolvable:$false] %s1277_s29 }
  0x63   : > { %s1279_s11 = scalar_lea.vmem %s1278_s29, 256  ;;  %p1280_p1 = scmp.lt.s32.totalorder %s1713_s3, %s1278_s29 }
  0x64   : > { %p1275_p9 = pnand %p1273_p0, %p1259_p6  ;;  %p1281_p12 = scmp.lt.s32.totalorder %s1279_s11, %s1272_s5 }
  0x66   : > { %p1276_p8 = pneg %p1275_p9  ;;  %p1282_p13 = por %p1281_p12, %p1280_p1 }
  0x68   : > { %p1283_p2 = pnand %p1282_p13, %p1276_p8 }
  0x6a   : > { %1286 = shalt.err (!%p1283_p2)
}
  0x6b   : > { %1064 = dma.hbm_to_vmem [thread:$0]  (!%p1719_p10), %s1708_s1, 128, %s1713_s3, %s230_s27  }
  0x6c   : > { %s80_s12 = sadd.s32 1, %s1447_s23  ;;  %p87_p8 = scmp.ne.s32.totalorder %s1447_s23, %s1443_s22 }
  0x6d   : > { %s1757_s4 = scalar_select %p1697_p5, %s1447_s23, %s80_s12  }
  0x6e   : > { %p2138_p1 = scmp.eq.s32.totalorder %s1487_s8, 0  ;;  %p93_p6 = scmp.ne.s32.totalorder %s1443_s22, %s1439_s21 }
  0x6f   : > { %s249_s13 = sand.u32 1, %s1487_s8   ;;  %s251_s2 = sand.u32 1, %s1447_s23  }
  0x70   : > { %p89_p3 = por %p87_p8, %p2138_p1  ;;  %p2139_p11 = scmp.eq.s32.totalorder %s1611_s9, 0 }
  0x71   : > { %s966_s14 = sshll.u32 %s251_s2, 3  ;;  %s968_s15 = sshll.u32 %s1724_s25, 7 }
  0x72   : > { %p1767_p4 = por %p93_p6, %p2139_p11  ;;  %s2141_s1 = sld [smem:[#allocation25_spill]] }
  0x73   : > { %s253_s19 = scalar_lea.vmem [#allocation5], %s966_s14  ;;  %p2142_p5 = scmp.lt.s32.totalorder %s1487_s8, 8 }
  0x74   : > { %s262_s21 = sshll.u32 %s253_s19, 4  ;;  %s250_s25 = scalar_lea.sflag [#allocation6], %s249_s13  ;;  %s1783_s21 = int_to_ptr.vmem [resolvable:$true] %s262_s21 }
  0x75   : > { %p1779_p10 = pnand %p2142_p5, %p89_p3 }
  0x77   : > { %p1289_p0 = pneg %p1779_p10 }
  0x78   : > { %s1775_s3 = scalar_lea.hbm %s2141_s1, %s968_s15  ;;  %s1292_s12 = scalar_lea.hbm %s2141_s1, 512 }
  0x79   : > { %s1287_s24 = scalar_lea.hbm %s1775_s3, 128  ;;  %p1293_p13 = scmp.lt.u32.totalorder %s1775_s3, %s2141_s1 }
  0x7a   : > { %p1288_p7 = scmp.ne.s32.totalorder %s1775_s3, %s1287_s24  ;;  %p1294_p2 = scmp.lt.u32.totalorder %s1292_s12, %s1287_s24 }
  0x7b   : > { %p1296_p1 = scmp.lt.u32.totalorder %s1287_s24, %s1775_s3 }
  0x7c   : > { %p1290_p9 = pnand %p1289_p0, %p1288_p7  ;;  %p1295_p8 = por %p1294_p2, %p1293_p13 }
  0x7e   : > { %p1291_p12 = pneg %p1290_p9  ;;  %p1297_p3 = por %p1296_p1, %p1295_p8 }
  0x80   : > { %p1298_p6 = pnand %p1297_p3, %p1291_p12 }
  0x82   : > { %1301 = shalt.err (!%p1298_p6)
}
  0x83   : > { %s1302_s13 = scalar_lea.vmem %s1783_s21, 128  ;;  %s1493_s15 = smov [#allocation5]  }
  0x84   : > { %p1303_p11 = scmp.ne.s32.totalorder %s1783_s21, %s1302_s13  ;;  %s1307_s16 = sshll.u32 %s1493_s15, 4  ;;  %s1308_s16 = int_to_ptr.vmem [resolvable:$false] %s1307_s16 }
  0x85   : > { %s1309_s5 = scalar_lea.vmem %s1308_s16, 256  ;;  %p1310_p9 = scmp.lt.s32.totalorder %s1783_s21, %s1308_s16 }
  0x86   : > { %p1305_p5 = pnand %p1303_p11, %p1289_p0  ;;  %p1311_p13 = scmp.lt.s32.totalorder %s1309_s5, %s1302_s13 }
  0x88   : > { %p1306_p7 = pneg %p1305_p5  ;;  %p1312_p2 = por %p1311_p13, %p1310_p9 }
  0x8a   : > { %p1313_p8 = pnand %p1312_p2, %p1306_p7 }
  0x8c   : > { %1316 = shalt.err (!%p1313_p8)
}
  0x8d   : > { %1067 = dma.hbm_to_vmem [thread:$0]  (!%p1779_p10), %s1775_s3, 128, %s1783_s21, %s250_s25  }
  0x8e   : > { %s2144_s19 = sld [smem:[#allocation21_spill]] }
  0x94   : > { %p2145_p12 = scmp.ne.s32.totalorder %s2144_s19, 0 }
  0x95   : > { %s2146_s24 = sld [smem:[#allocation15_spill]] (!%p2145_p12)  ;;  %s2147_s29 = sld [smem:[#allocation23_spill]] (!%p2145_p12) }
  0x96   : > { %271 = sbr.rel (%p2145_p12) target bundleno = 736 (0x2e0), region = 40 }
  0x9b   : > { %s273_s11 = sand.u32 (!%p2145_p12), 1, %s2146_s24   ;;  %p2148_p0 = scmp.ne.s32.totalorder (!%p2145_p12), %s2147_s29, 0 }
  0x9c   : > { %s1813_s12 = sshll.u32 (!%p2145_p12), %s273_s11, 3  ;;  %s274_s2 = scalar_lea.sflag (!%p2145_p12), [#allocation3], %s273_s11 }
  0x9d   : > { %s277_s14 = scalar_lea.vmem [#allocation2], %s1813_s12 }
  0x9e   : > { %1410 = dma.done.wait (%p2148_p0), %s274_s2, 128  }
  0x9f   : > { %1412 = vsyncadd (%p2148_p0), %s274_s2, 4294967168  ;;  %s282_s3 = sand.u32 1, %s1611_s9   ;;  %s284_s21 = sand.u32 1, %s1443_s22  }
  0xa0   : > { %s1822_s27 = sshll.u32 %s284_s21, 3  ;;  %s283_s25 = scalar_lea.sflag [#allocation6], %s282_s3 }
  0xa1   : > { %s286_s13 = scalar_lea.vmem [#allocation5], %s1822_s27 }
  0xa2   : > { %1414 = dma.done.wait (%p1767_p4), %s283_s25, 128  }
  0xa3   : > { %1416 = vsyncadd (%p1767_p4), %s283_s25, 4294967168  ;;  %s2149_s15 = sld [smem:[#allocation17_spill]]  ;;  %s2150_s16 = sld [smem:[#allocation16_spill]]  ;;  %v325_v0 = vlaneseq }
  0xa4   : > { %p2151_p10 = scmp.eq.s32.totalorder %s1611_s9, 0 }
  0xa9   : > { %s974_s5 = sshll.u32 %s2149_s15, 3  ;;  %s975_s19 = sshll.u32 %s2150_s16, 3 }
  0xaa   : > { %1418 = dma.done.wait (%p2151_p10), [#allocation6], 512   ;;  %p2152_p1 = pmov %p2151_p10 }
  0xab   : > { %v327_v1 = vstv %s974_s5  ;;  %v331_v2 = vstv %s975_s19  ;;  %v1835_v3 = vshrl.u32 %v325_v0, 7  ;;  %v1837_v4 = vand.u32 127, %v325_v0  ;;  %v417_v8 = vld [vmem:[#allocation7] sm:$0xff]  ;;  %v418_v9 = vld [vmem:[#allocation7 + $0x8] sm:$0xff]  ;;  %v419_v10 = vld [vmem:[#allocation7 + $0x10] sm:$0xff]  ;;  %s2153_s9 = sld [smem:[#allocation14_spill]] }
  0xac   : > { %1420 = vsyncadd (%p2152_p1), [#allocation6], 4294966784  ;;  %v1035_v14 = vpack.c.bf16 %v418_v9, %v417_v8  ;;  %v420_v15 = vld [vmem:[#allocation7 + $0x18] sm:$0xff]  ;;  %vm421_vm0 = vcmask 261120   ;;  %v1494_v34 = vmov 0.0   ;;  %v560_v53 = vld [vmem:[%s277_s14] sm:$0xff] }
  0xad   : > { %v328_v5 = vadd.s32 %v327_v1, %v1835_v3  ;;  %v332_v6 = vadd.s32 %v331_v2, %v1837_v4  ;;  %v1842_v12 = vsub.s32 0, %v1835_v3  ;;  %v346_v13 = vsub.s32 1, %v1835_v3  ;;  %v551_v60 = vld [vmem:[%s286_s13] sm:$0xff]  ;;  %s2154_s29 = sld [smem:[#allocation27_spill]]  ;;  %s2155_s14 = sld [smem:[#allocation28_spill]] }
  0xae   : > { %v1039_v16 = vpack.c.bf16 %v420_v15, %v419_v10  ;;  %v367_v18 = vsub.s32 4, %v1835_v3  ;;  %v374_v19 = vsub.s32 5, %v1835_v3  ;;  %1036 = vmatprep.subr.bf16.mxu0 %v1035_v14  ;;  %1043 = vmatprep.subr.bf16.mxu1 %v1035_v14  ;;  %v381_v24 = vsub.s32 6, %v1835_v3  ;;  %s2156_s27 = sld [smem:[#allocation18_spill]]  ;;  %s1002_s25 = sshll.u32 %s2149_s15, 4 }
  0xaf   : > { %v333_v7 = vsub.s32 %v332_v6, %v328_v5  ;;  %1038 = vmatpush3.bf16.msra.mxu0 %v1035_v14  ;;  %1045 = vmatpush3.bf16.msra.mxu1 %v1035_v14  ;;  %v353_v25 = vsub.s32 2, %v1835_v3  ;;  %v388_v28 = vsub.s32 7, %v1835_v3  ;;  %v360_v29 = vsub.s32 3, %v1835_v3  ;;  %s823_s13 = sadd.s32 %s2150_s16, %s1002_s25  ;;  %s2157_s16 = sld [smem:[#allocation19_spill]] }
  0xb0   : > { %1040 = vmatprep.subr.bf16.mxu0 %v1039_v16  ;;  %1044 = vmatprep.subr.bf16.mxu1 %v1039_v16  ;;  %v1495_v49 = vmov 1966171168   ;;  %v562_v55 = vcombine.high %v560_v53, %v560_v53  ;;  %s2158_s12 = sld [smem:[#allocation29_spill]] }
  0xb1   : > { %v335_v11 = vsub.s32 0, %v333_v7  ;;  %v564_v50 = vunpack.c.l.s4 %v1495_v49  ;;  %s319_s11 = sand.u32 1, %s2153_s9  }
  0xb2   : > { %s973_s3 = sshll.u32 %s319_s11, 6 }
  0xb3   : > { %v976_v17 = vmin.u32 %v335_v11, %v333_v7  ;;  %1042 = vmatpush3.bf16.msra.mxu0 %v1039_v16  ;;  %1046 = vmatpush3.bf16.msra.mxu1 %v1039_v16  ;;  %v565_v51 = vunpack.c.0.s8 %v564_v50  ;;  %s1958_s21 = scalar_lea.vmem [#allocation8], %s973_s3 }
  0xb4   : > { %s998_s5 = sshll.u32 %s2156_s27, 5  ;;  %s828_s17 = sshll.u32 %s1958_s21, 4  ;;  %s1996_s17 = int_to_ptr.vmem [resolvable:$true] %s828_s17 }
  0xb5   : > { %v340_v20 = vrot.slane %v976_v17, %v1842_v12  ;;  %v347_v21 = vrot.slane %v976_v17, %v346_v13  ;;  %v368_v22 = vrot.slane %v976_v17, %v367_v18  ;;  %v375_v23 = vrot.slane %v976_v17, %v374_v19  ;;  %s825_s15 = sadd.s32 %s998_s5, %s823_s13  ;;  %s1317_s3 = scalar_lea.vmem %s1996_s17, 1024 }
  0xb6   : > { %v382_v26 = vrot.slane %v976_v17, %v381_v24  ;;  %v354_v27 = vrot.slane %v976_v17, %v353_v25  ;;  %v389_v30 = vrot.slane %v976_v17, %v388_v28  ;;  %v361_v31 = vrot.slane %v976_v17, %v360_v29  ;;  %s999_s19 = sshll.u32 %s825_s15, 7  ;;  %p1318_p4 = scmp.ne.s32.totalorder %s1996_s17, %s1317_s3 }
  0xb7   : > { %342 = vbcast.lane.b32.xlu0 %v340_v20, 256  ;;  %349 = vbcast.lane.b32.xlu1 %v347_v21, 256  ;;  %v568_v52 = vsub.s32 %v565_v51, %v1835_v3  ;;  %s1994_s2 = scalar_lea.hbm %s2158_s12, %s999_s19  ;;  %p2159_p3 = scmp.ne.s32.totalorder %s2157_s16, 0 }
  0xb8   : > { %s1496_s27 = smov [#allocation8]  }
  0xb9   : > { %v569_v54 = vrot.slane %v560_v53, %v568_v52  ;;  %v576_v57 = vrot.slane %v562_v55, %v568_v52  ;;  %p1319_p6 = pnand %p1318_p4, %p2159_p3  ;;  %s1321_s25 = sshll.u32 %s1496_s27, 4  ;;  %s1322_s25 = int_to_ptr.vmem [resolvable:$false] %s1321_s25 }
  0xba   : > { %s1323_s13 = scalar_lea.vmem %s1322_s25, 2048  ;;  %p1324_p5 = scmp.lt.s32.totalorder %s1996_s17, %s1322_s25 }
  0xbb   : > { %370 = vbcast.lane.b32.xlu0 %v368_v22, 256  ;;  %377 = vbcast.lane.b32.xlu1 %v375_v23, 256  ;;  %v577_v56 = vcombine.high %v569_v54, %v569_v54  ;;  %v578_v59 = vcombine.high %v576_v57, %v576_v57  ;;  %v585_v0 = vrot.slane %v569_v54, %v568_v52  ;;  %p1320_p11 = pneg %p1319_p6  ;;  %p1325_p7 = scmp.lt.s32.totalorder %s1323_s13, %s1317_s3 }
  0xbc   : > { %v592_v1 = vrot.slane %v576_v57, %v568_v52 }
  0xbd   : > { %v599_v58 = vrot.slane %v577_v56, %v568_v52  ;;  %v606_v62 = vrot.slane %v578_v59, %v568_v52  ;;  %v614_v7 = vrot.slane %v585_v0, %v1842_v12  ;;  %v607_v18 = vcombine.high %v585_v0, %v585_v0  ;;  %p1326_p9 = por %p1325_p7, %p1324_p5 }
  0xbe   : > { %v630_v9 = vrot.slane %v592_v1, %v1842_v12  ;;  %v608_v17 = vcombine.high %v592_v1, %v592_v1 }
  0xbf   : > { %384 = vbcast.lane.b32.xlu1 %v382_v26, 256  ;;  %356 = vbcast.lane.b32.xlu0 %v354_v27, 256  ;;  %v618_v61 = vrot.slane %v599_v58, %v1842_v12  ;;  %v634_v3 = vrot.slane %v606_v62, %v1842_v12  ;;  %v609_v24 = vcombine.high %v599_v58, %v599_v58  ;;  %p1327_p13 = pnand %p1326_p9, %p1320_p11 }
  0xc0   : > { %v638_v26 = vrot.slane %v608_v17, %v1842_v12  ;;  %v622_v28 = vrot.slane %v607_v18, %v1842_v12 }
  0xc3   : > { %391 = vbcast.lane.b32.xlu1 %v389_v30, 256  ;;  %363 = vbcast.lane.b32.xlu0 %v361_v31, 256  ;;  %v610_v31 = vcombine.high %v606_v62, %v606_v62 }
 0x129   : > { %v343_v32 = vpop.permute.xlu0 %342  ;;  %v350_v33 = vpop.permute.xlu1 %349 }
 0x12a   : > { %vm393_vm1 = vcmp.eq.s32.totalorder %v343_v32, %v1837_v4  ;;  %vm394_vm2 = vcmp.eq.s32.totalorder %v350_v33, %v1837_v4  ;;  %v626_v33 = vrot.slane %v609_v24, %v1842_v12 }
 0x12b   : > { %v978_v35 = vsel %vm394_vm2, 1.0, %v1494_v34  ;;  %v977_v36 = vsel %vm393_vm1, 1.0, %v1494_v34 }
 0x12c   : > { %1023 = vmatprep.mubr.msk.f32.mxu0 %vm421_vm0, %v977_v36 }
 0x12d   : > { %v371_v37 = vpop.permute.xlu0 %370  ;;  %1024 = vmatmul.mubr.msk.f32.vlgmr.msra.gmra.mrb[0].mxu0 %vm421_vm0, %v978_v35  ;;  %v378_v38 = vpop.permute.xlu1 %377 }
 0x12e   : > { %vm397_vm3 = vcmp.eq.s32.totalorder %v371_v37, %v1837_v4  ;;  %vm398_vm4 = vcmp.eq.s32.totalorder %v378_v38, %v1837_v4  ;;  %v642_v38 = vrot.slane %v610_v31, %v1842_v12 }
 0x12f   : > { %v982_v39 = vsel %vm398_vm4, 1.0, %v1494_v34  ;;  %v981_v40 = vsel %vm397_vm3, 1.0, %v1494_v34 }
 0x130   : > { %1029 = vmatprep.mubr.msk.f32.mxu1 %vm421_vm0, %v981_v40 }
 0x131   : > { %1030 = vmatmul.mubr.msk.f32.vlgmr.msra.gmra.mrb[0].mxu1 %vm421_vm0, %v982_v39  ;;  %v385_v41 = vpop.permute.xlu1 %384  ;;  %v357_v42 = vpop.permute.xlu0 %356 }
 0x132   : > { %vm399_vm5 = vcmp.eq.s32.totalorder %v385_v41, %v1837_v4  ;;  %vm395_vm6 = vcmp.eq.s32.totalorder %v357_v42, %v1837_v4 }
 0x133   : > { %v983_v43 = vsel %vm399_vm5, 1.0, %v1494_v34  ;;  %v979_v44 = vsel %vm395_vm6, 1.0, %v1494_v34 }
 0x134   : > { %1032 = vmatprep.mubr.msk.f32.mxu1 %vm421_vm0, %v983_v43  ;;  %1026 = vmatprep.mubr.msk.f32.mxu0 %vm421_vm0, %v979_v44 }
 0x135   : > { %v392_v45 = vpop.permute.xlu1 %391  ;;  %v364_v46 = vpop.permute.xlu0 %363 }
 0x136   : > { %vm400_vm7 = vcmp.eq.s32.totalorder %v392_v45, %v1837_v4  ;;  %vm396_vm8 = vcmp.eq.s32.totalorder %v364_v46, %v1837_v4 }
 0x137   : > { %v984_v47 = vsel %vm400_vm7, 1.0, %v1494_v34  ;;  %v980_v48 = vsel %vm396_vm8, 1.0, %v1494_v34 }
 0x138   : > { %1033 = vmatmul.mubr.msk.f32.gmra.mrb[2].mxu1 %vm421_vm0, %v984_v47  ;;  %1027 = vmatmul.mubr.msk.f32.gmra.mrb[2].mxu0 %vm421_vm0, %v980_v48 }
 0x200   : > { %v1025_v63 = vpop.f32.mrb[0].mxu0 }
 0x201   : > { %v553_v2 = vadd.f32 %v1025_v63, %v551_v60  ;;  %v512_v4 = vpop.f32.mrb[1].mxu0 }
 0x202   : > { %v552_v6 = vadd.f32 %v551_v60, %v512_v4 }
 0x203   : > { %v1874_v5 = vadd.f32 %v618_v61, %v553_v2 }
 0x204   : > { %v1031_v8 = vpop.f32.mrb[0].mxu1  ;;  %v1882_v15 = vadd.f32 %v614_v7, %v552_v6 }
 0x205   : > { %v557_v10 = vadd.f32 %v1031_v8, %v551_v60  ;;  %v532_v11 = vpop.f32.mrb[1].mxu1  ;;  %661 = vadd.xlane.f32.xlu1 %v1874_v5  ;;  %v685_v29 = vmul.f32 %v1874_v5, %v1874_v5 }
 0x206   : > { %v556_v13 = vadd.f32 %v551_v60, %v532_v11  ;;  %v684_v21 = vmul.f32 %v1882_v15, %v1882_v15 }
 0x207   : > { %v1880_v14 = vadd.f32 %v634_v3, %v557_v10 }
 0x208   : > { %v1884_v16 = vadd.f32 %v630_v9, %v556_v13 }
 0x209   : > { %669 = vadd.xlane.f32.xlu0 %v1880_v14  ;;  %v689_v36 = vmul.f32 %v1880_v14, %v1880_v14 }
 0x20a   : > { %667 = vadd.xlane.f32.xlu1 %v1884_v16  ;;  %v688_v30 = vmul.f32 %v1884_v16, %v1884_v16 }
 0x20b   : > { %v1034_v19 = vpop.f32.mrb[2].mxu1  ;;  %v1028_v20 = vpop.f32.mrb[2].mxu0 }
 0x20c   : > { %v542_v22 = vpop.f32.mrb[3].mxu1  ;;  %v522_v23 = vpop.f32.mrb[3].mxu0  ;;  %v555_v32 = vadd.f32 %v1028_v20, %v551_v60  ;;  %v559_v37 = vadd.f32 %v1034_v19, %v551_v60  ;;  %v1932_v19 = vld [vmem:[%s2154_s29] ss:$0 sm:$0xff] }
 0x20d   : > { %659 = vadd.xlane.f32.xlu0 %v1882_v15  ;;  %v558_v25 = vadd.f32 %v551_v60, %v542_v22  ;;  %v554_v27 = vadd.f32 %v551_v60, %v522_v23 }
 0x20e   : > { %692 = vadd.xlane.f32.xlu1 %v684_v21  ;;  %v1905_v39 = vadd.f32 %v626_v33, %v555_v32  ;;  %v1910_v41 = vadd.f32 %v642_v38, %v559_v37 }
 0x20f   : > { %v1898_v34 = vadd.f32 %v638_v26, %v558_v25  ;;  %v1900_v35 = vadd.f32 %v622_v28, %v554_v27  ;;  %v1939_v27 = vld [vmem:[%s2155_s14] ss:$0 sm:$0xff]  ;;  %s2001_s14 = scalar_lea.sflag [#allocation4], %s319_s11 }
 0x210   : > { %v687_v12 = vmul.f32 %v1905_v39, %v1905_v39  ;;  %v691_v43 = vmul.f32 %v1910_v41, %v1910_v41 }
 0x211   : > { %694 = vadd.xlane.f32.xlu0 %v685_v29  ;;  %v686_v40 = vmul.f32 %v1900_v35, %v1900_v35  ;;  %v690_v42 = vmul.f32 %v1898_v34, %v1898_v34 }
 0x212   : > { %700 = vadd.xlane.f32.xlu1 %v688_v30 }
 0x215   : > { %702 = vadd.xlane.f32.xlu0 %v689_v36 }
 0x216   : > { %671 = vadd.xlane.f32.xlu1 %v1898_v34 }
 0x219   : > { %665 = vadd.xlane.f32.xlu0 %v1905_v39 }
 0x21a   : > { %696 = vadd.xlane.f32.xlu1 %v686_v40 }
 0x21d   : > { %673 = vadd.xlane.f32.xlu0 %v1910_v41 }
 0x21e   : > { %704 = vadd.xlane.f32.xlu1 %v690_v42 }
 0x221   : > { %663 = vadd.xlane.f32.xlu0 %v1900_v35 }
 0x225   : > { %698 = vadd.xlane.f32.xlu0 %v687_v12 }
 0x229   : > { %706 = vadd.xlane.f32.xlu0 %v691_v43 }
 0x292   : > { %v662_v44 = vpop.xlane.xlu1 %661 }
 0x293   : > { %v677_v48 = vmul.f32 0.0078125, %v662_v44 }
 0x295   : > { %v717_v55 = vmul.f32 %v677_v48, %v677_v48 }
 0x296   : > { %v670_v45 = vpop.xlane.xlu0 %669 }
 0x297   : > { %v668_v46 = vpop.xlane.xlu1 %667  ;;  %v1921_v56 = vmul.f32 0.0078125, %v670_v45 }
 0x298   : > { %v680_v51 = vmul.f32 0.0078125, %v668_v46 }
 0x299   : > { %v721_v2 = vmul.f32 %v1921_v56, %v1921_v56 }
 0x29a   : > { %v660_v47 = vpop.xlane.xlu0 %659  ;;  %v720_v60 = vmul.f32 %v680_v51, %v680_v51 }
 0x29b   : > { %v676_v49 = vmul.f32 0.0078125, %v660_v47  ;;  %v693_v50 = vpop.xlane.xlu1 %692 }
 0x29c   : > { %v708_v52 = vmul.f32 0.0078125, %v693_v50 }
 0x29d   : > { %v716_v53 = vmul.f32 %v676_v49, %v676_v49 }
 0x29e   : > { %v695_v54 = vpop.xlane.xlu0 %694 }
 0x29f   : > { %v724_v57 = vsub.f32 %v708_v52, %v716_v53  ;;  %v709_v58 = vmul.f32 0.0078125, %v695_v54  ;;  %v701_v59 = vpop.xlane.xlu1 %700 }
 0x2a0   : > { %v712_v61 = vmul.f32 0.0078125, %v701_v59 }
 0x2a1   : > { %v732_v62 = vadd.f32 1e-12, %v724_v57  ;;  %v725_v63 = vsub.f32 %v709_v58, %v717_v55 }
 0x2a2   : > { %v728_v0 = vsub.f32 %v712_v61, %v720_v60  ;;  %v703_v1 = vpop.xlane.xlu0 %702 }
 0x2a3   : > { %1213 = vrsqrt.f32 %v732_v62  ;;  %v733_v4 = vadd.f32 1e-12, %v725_v63  ;;  %v713_v3 = vmul.f32 0.0078125, %v703_v1  ;;  %v672_v6 = vpop.xlane.xlu1 %671 }
 0x2a4   : > { %v736_v7 = vadd.f32 1e-12, %v728_v0  ;;  %v1925_v9 = vmul.f32 0.0078125, %v672_v6 }
 0x2a5   : > { %1215 = vrsqrt.f32 %v733_v4  ;;  %v729_v8 = vsub.f32 %v713_v3, %v721_v2 }
 0x2a6   : > { %1217 = vrsqrt.f32 %v736_v7  ;;  %v666_v10 = vpop.xlane.xlu0 %665  ;;  %v722_v17 = vmul.f32 %v1925_v9, %v1925_v9 }
 0x2a7   : > { %v737_v11 = vadd.f32 1e-12, %v729_v8  ;;  %v697_v13 = vpop.xlane.xlu1 %696  ;;  %v1941_v28 = vmul.f32 0.0078125, %v666_v10 }
 0x2a8   : > { %v710_v37 = vmul.f32 0.0078125, %v697_v13 }
 0x2a9   : > { %1219 = vrsqrt.f32 %v737_v11  ;;  %v719_v47 = vmul.f32 %v1941_v28, %v1941_v28 }
 0x2aa   : > { %v674_v18 = vpop.xlane.xlu0 %673 }
 0x2ab   : > { %v705_v20 = vpop.xlane.xlu1 %704  ;;  %v1947_v38 = vmul.f32 0.0078125, %v674_v18 }
 0x2ac   : > { %v714_v21 = vmul.f32 0.0078125, %v705_v20 }
 0x2ad   : > { %v1214_v22 = vpop.eup %1213 }
 0x2ae   : > { %v755_v23 = vmul.f32 %v1214_v22, %v1932_v19  ;;  %v730_v24 = vsub.f32 %v714_v21, %v722_v17  ;;  %v664_v25 = vpop.xlane.xlu0 %663 }
 0x2af   : > { %v1216_v26 = vpop.eup %1215  ;;  %v678_v29 = vmul.f32 0.0078125, %v664_v25 }
 0x2b0   : > { %v1218_v30 = vpop.eup %1217  ;;  %v764_v31 = vmul.f32 %v755_v23, %v676_v49  ;;  %v756_v32 = vmul.f32 %v1216_v26, %v1932_v19  ;;  %v738_v33 = vadd.f32 1e-12, %v730_v24  ;;  %v786_v12 = vmul.f32 %v755_v23, %v1882_v15 }
 0x2b1   : > { %v759_v36 = vmul.f32 %v1218_v30, %v1932_v19  ;;  %v718_v40 = vmul.f32 %v678_v29, %v678_v29 }
 0x2b2   : > { %v778_v42 = vsub.f32 %v1939_v27, %v764_v31  ;;  %v765_v43 = vmul.f32 %v756_v32, %v677_v48  ;;  %1221 = vrsqrt.f32 %v738_v33  ;;  %v699_v44 = vpop.xlane.xlu0 %698  ;;  %v787_v54 = vmul.f32 %v756_v32, %v1874_v5 }
 0x2b3   : > { %v1220_v45 = vpop.eup %1219  ;;  %v768_v46 = vmul.f32 %v759_v36, %v680_v51  ;;  %v726_v49 = vsub.f32 %v710_v37, %v718_v40  ;;  %v711_v50 = vmul.f32 0.0078125, %v699_v44  ;;  %v790_v15 = vmul.f32 %v759_v36, %v1884_v16 }
 0x2b4   : > { %v794_v52 = vadd.f32 %v786_v12, %v778_v42  ;;  %v779_v53 = vsub.f32 %v1939_v27, %v765_v43  ;;  %v760_v55 = vmul.f32 %v1220_v45, %v1932_v19  ;;  %v723_v5 = vmul.f32 %v1947_v38, %v1947_v38 }
 0x2b5   : > { %v782_v57 = vsub.f32 %v1939_v27, %v768_v46  ;;  %v734_v48 = vadd.f32 1e-12, %v726_v49  ;;  %v727_v58 = vsub.f32 %v711_v50, %v719_v47 }
 0x2b6   : > { %802 = vst [vmem:[%s1958_s21] sm:$0xff] %v794_v52  ;;  %v795_v51 = vadd.f32 %v787_v54, %v779_v53  ;;  %v769_v59 = vmul.f32 %v760_v55, %v1921_v56  ;;  %v707_v60 = vpop.xlane.xlu0 %706  ;;  %v791_v0 = vmul.f32 %v760_v55, %v1880_v14 }
 0x2b7   : > { %v798_v61 = vadd.f32 %v790_v15, %v782_v57  ;;  %1223 = vrsqrt.f32 %v734_v48  ;;  %v735_v16 = vadd.f32 1e-12, %v727_v58  ;;  %v715_v62 = vmul.f32 0.0078125, %v707_v60 }
 0x2b8   : > { %803 = vst [vmem:[%s1958_s21 + $0x8] sm:$0xff] %v795_v51  ;;  %v783_v63 = vsub.f32 %v1939_v27, %v769_v59 }
 0x2b9   : > { %806 = vst [vmem:[%s1958_s21 + $0x20] sm:$0xff] %v798_v61  ;;  %1225 = vrsqrt.f32 %v735_v16  ;;  %v731_v1 = vsub.f32 %v715_v62, %v723_v5 }
 0x2ba   : > { %v799_v56 = vadd.f32 %v791_v0, %v783_v63 }
 0x2bb   : > { %v739_v2 = vadd.f32 1e-12, %v731_v1 }
 0x2bc   : > { %v1222_v4 = vpop.eup %1221  ;;  %807 = vst [vmem:[%s1958_s21 + $0x28] sm:$0xff] %v799_v56 }
 0x2bd   : > { %v761_v3 = vmul.f32 %v1222_v4, %v1932_v19  ;;  %1227 = vrsqrt.f32 %v739_v2 }
 0x2bf   : > { %v770_v6 = vmul.f32 %v761_v3, %v1925_v9  ;;  %v792_v14 = vmul.f32 %v761_v3, %v1898_v34 }
 0x2c1   : > { %v1224_v7 = vpop.eup %1223  ;;  %v784_v8 = vsub.f32 %v1939_v27, %v770_v6 }
 0x2c2   : > { %v757_v10 = vmul.f32 %v1224_v7, %v1932_v19 }
 0x2c3   : > { %v1226_v11 = vpop.eup %1225  ;;  %v800_v13 = vadd.f32 %v792_v14, %v784_v8 }
 0x2c4   : > { %v766_v17 = vmul.f32 %v757_v10, %v678_v29  ;;  %v758_v18 = vmul.f32 %v1226_v11, %v1932_v19  ;;  %v788_v20 = vmul.f32 %v757_v10, %v1900_v35 }
 0x2c5   : > { %808 = vst [vmem:[%s1958_s21 + $0x30] sm:$0xff] %v800_v13 }
 0x2c6   : > { %v780_v9 = vsub.f32 %v1939_v27, %v766_v17  ;;  %v767_v21 = vmul.f32 %v758_v18, %v1941_v28  ;;  %v789_v24 = vmul.f32 %v758_v18, %v1905_v39 }
 0x2c7   : > { %v1228_v34 = vpop.eup %1227 }
 0x2c8   : > { %v796_v22 = vadd.f32 %v788_v20, %v780_v9  ;;  %v781_v23 = vsub.f32 %v1939_v27, %v767_v21  ;;  %v762_v25 = vmul.f32 %v1228_v34, %v1932_v19 }
 0x2ca   : > { %804 = vst [vmem:[%s1958_s21 + $0x10] sm:$0xff] %v796_v22  ;;  %v797_v26 = vadd.f32 %v789_v24, %v781_v23  ;;  %v771_v29 = vmul.f32 %v762_v25, %v1947_v38  ;;  %v793_v28 = vmul.f32 %v762_v25, %v1910_v41 }
 0x2cc   : > { %805 = vst [vmem:[%s1958_s21 + $0x18] sm:$0xff] %v797_v26  ;;  %v785_v35 = vsub.f32 %v1939_v27, %v771_v29 }
 0x2ce   : > { %v801_v39 = vadd.f32 %v793_v28, %v785_v35 }
 0x2d0   : > { %809 = vst [vmem:[%s1958_s21 + $0x38] sm:$0xff] %v801_v39 }
 0x2d1   : > { %1330 = shalt.err (!%p1327_p13)
}
 0x2d2   : > { %s1331_s9 = scalar_lea.hbm %s1994_s2, 1024  ;;  %s1335_s5 = scalar_lea.hbm %s2158_s12, 8192 }
 0x2d3   : > { %p1332_p2 = scmp.ne.s32.totalorder %s1994_s2, %s1331_s9  ;;  %p1336_p0 = scmp.lt.u32.totalorder %s1994_s2, %s2158_s12 }
 0x2d4   : > { %p1337_p10 = scmp.lt.u32.totalorder %s1335_s5, %s1331_s9  ;;  %p1339_p4 = scmp.lt.u32.totalorder %s1331_s9, %s1994_s2 }
 0x2d5   : > { %p1333_p8 = pnand %p1332_p2, %p2159_p3 }
 0x2d6   : > { %p1338_p1 = por %p1337_p10, %p1336_p0 }
 0x2d7   : > { %p1334_p12 = pneg %p1333_p8 }
 0x2d8   : > { %p1340_p6 = por %p1339_p4, %p1338_p1 }
 0x2da   : > { %p1341_p11 = pnand %p1340_p6, %p1334_p12 }
 0x2dc   : > { %1344 = shalt.err (!%p1341_p11)
}
 0x2dd   : > { %s1497_s24 = smov 128   ;;  %s1498_s29 = smov 256  }
 0x2de   : > { %s1499_s3 = smov 8  }
 0x2df   : > { %1055 = dma.vmem_to_hbm [thread:$0]  (%p2159_p3), %s1996_s17, 1024, %s1994_s2, %s2001_s14, %s1497_s24, %s1498_s29, %s1499_s3  }
 0x2e0 PF: > { %s2160_s27 = sld [smem:[#allocation13_spill]]  ;;  %s2161_s25 = sld [smem:[#allocation20_spill]] }
 0x2e1   : > { %p1075_p5 = scmp.ge.s32.totalorder %s1487_s8, 2 }
 0x2e6   : > { %s843_s13 = sand.u32 1, %s2160_s27   ;;  %p2162_p7 = scmp.ne.s32.totalorder %s2161_s25, 0 }
 0x2e7   : > { %s844_s9 = scalar_lea.sflag [#allocation4], %s843_s13 }
 0x2e8   : > { %p1069_p9 = pnand %p1075_p5, %p2162_p7 }
 0x2ea   : > { %1422 = dma.done.wait (!%p1069_p9), %s844_s9, 1024  }
 0x2eb   : > { %1424 = vsyncadd (!%p1069_p9), %s844_s9, 4294966272  ;;  %s24_s8 = sadd.s32 1, %s1487_s8   ;;  %s2164_s21 = sld [smem:[#allocation14_spill]] }
 0x2ec   : > { %p2030_p13 = scmp.ge.s32.totalorder %s24_s8, 10   ;;  %s2165_s16 = smov %s1711_s18 }
 0x2ed   : > { %s2166_s24 = sld [smem:[#allocation15_spill]]  ;;  %s2167_s17 = sld [smem:[#allocation22_spill]] }
 0x2ee   : > { %s2168_s2 = sld [smem:[#allocation24_spill]]  ;;  %s2170_s19 = smov %s1435_s20 }
 0x2ef   : > { %s2171_s20 = smov %s2165_s16  ;;  %s2175_s25 = smov %s1459_s26 }
 0x2f0   : > { %s2176_s26 = smov %s1703_s28  ;;  %s2177_s27 = smov %s1475_s30 }
 0x2f1   : > { %s2169_s18 = smov %s2164_s21  ;;  %s2172_s21 = smov %s1443_s22 }
 0x2f2   : > { %s2173_s22 = smov %s1447_s23  ;;  %s2174_s23 = smov %s1757_s4 }
 0x2f3   : > { %s2178_s28 = smov %s1479_s6  ;;  %s2179_s29 = smov %s1483_s7 }
 0x2f4   : > { %s2180_s30 = smov %s2167_s17  ;;  %s2181_s6 = smov %s2168_s2 }
 0x2f5   : > { %s2182_s7 = smov %s2192_s10  ;;  %23 = sbr.rel (!%p2030_p13) target bundleno = 19 (0x13), region = 102 }
 0x2fc   :  { %849 = vsyncpa [#allocation3], 1 }
 0x2fd   :  { %851 = vsyncpa [#allocation3 + $0x1], 1 }
 0x2fe   :  { %852 = vsyncpa [#allocation6], 1 }
 0x2ff   :  { %854 = vsyncpa [#allocation6 + $0x1], 1 }
 0x300   :  { %855 = vsyncpa [#allocation4], 1 }
 0x301   :  { %857 = vsyncpa [#allocation4 + $0x1], 1 }

</bundles_post_ra>
